<compile_context>
chip_gen: v5e
topology: v5e:2x2
jax: 0.10.0
libtpu: 0.0.40
codegen_flags: <defaults>
</compile_context>

<pallas_src>
import jax
import jax.numpy as jnp
from jax.experimental import pallas as pl
from jax.experimental.pallas import tpu as pltpu


# ----------------------------- helpers ------------------------------------- #

def _round_up(n, m):
    return ((n + m - 1) // m) * m


def _pick_tm(b, cap=4096, min_steps=2):
    """Row-tile size: as large as possible (amortize per-step overhead) while
    keeping at least `min_steps` grid steps so the parallel batch axis can be
    sharded across both TensorCores on v7x.  Multiple of 8 (f32/bf16 sublanes)."""
    target = pl.cdiv(max(int(b), 1), min_steps)
    return max(8, min(cap, _round_up(target, 8)))


# ----------------------------- Pallas kernels ------------------------------ #

def _mapping_kernel(x_ref, w_ref, o_ref):
    """h = x @ Wc  (collapsed bias-free linear chain), bf16 in -> f32 acc on MXU."""
    o_ref[...] = jnp.dot(x_ref[...], w_ref[...],
                         preferred_element_type=jnp.float32).astype(o_ref.dtype)


def _dot_score_kernel(u_ref, v_ref, o_ref):
    """score[b] = sum_d u[b,d] * v[b,d]; multiply in storage dtype, reduce in f32."""
    prod = u_ref[...] * v_ref[...]                     # bf16 VALU on v6e/v7x
    o_ref[...] = jnp.sum(prod.astype(jnp.float32), axis=1, keepdims=True)


def _map_dot_kernel(u_ref, w_ref, v_ref, o_ref):
    """Fused test_map: score[b] = sum_d (u @ Wc)[b,d] * v[b,d]."""
    h = jnp.dot(u_ref[...], w_ref[...], preferred_element_type=jnp.float32)  # MXU
    o_ref[...] = jnp.sum(h * v_ref[...].astype(jnp.float32), axis=1, keepdims=True)


# ------------------------------ Pallas wrappers ----------------------------- #

_PAR = pltpu.CompilerParams(dimension_semantics=("parallel",))


def mapping_forward(x, wc, *, tm=None, out_dtype=jnp.float32):
    """x: [B, D] bf16, wc: [D, D] bf16 (collapsed, [in,out]) -> [B, D] out_dtype."""
    B, D = x.shape
    tm = _pick_tm(B) if tm is None else tm
    return pl.pallas_call(
        _mapping_kernel,
        out_shape=jax.ShapeDtypeStruct((B, D), out_dtype),
        grid=(pl.cdiv(B, tm),),
        in_specs=[pl.BlockSpec((tm, D), lambda i: (i, 0)),
                  pl.BlockSpec((D, D), lambda i: (0, 0))],      # weight pinned
        out_specs=pl.BlockSpec((tm, D), lambda i: (i, 0)),
        compiler_params=_PAR,
    )(x, wc)


def dot_score(u, v, *, tm=None):
    """u, v: [B, D] (bf16) -> [B] f32 row-wise dot product."""
    B, D = u.shape
    tm = _pick_tm(B) if tm is None else tm
    out = pl.pallas_call(
        _dot_score_kernel,
        out_shape=jax.ShapeDtypeStruct((B, 1), jnp.float32),
        grid=(pl.cdiv(B, tm),),
        in_specs=[pl.BlockSpec((tm, D), lambda i: (i, 0)),
                  pl.BlockSpec((tm, D), lambda i: (i, 0))],
        out_specs=pl.BlockSpec((tm, 1), lambda i: (i, 0)),
        compiler_params=_PAR,
    )(u, v)
    return out[:, 0]


def map_dot_score(u, wc, v, *, tm=None):
    """u (src user emb) [B,D], wc [D,D], v (tgt item emb) [B,D] -> [B] f32."""
    B, D = u.shape
    tm = _pick_tm(B) if tm is None else tm
    out = pl.pallas_call(
        _map_dot_kernel,
        out_shape=jax.ShapeDtypeStruct((B, 1), jnp.float32),
        grid=(pl.cdiv(B, tm),),
        in_specs=[pl.BlockSpec((tm, D), lambda i: (i, 0)),
                  pl.BlockSpec((D, D), lambda i: (0, 0)),       # weight pinned
                  pl.BlockSpec((tm, D), lambda i: (i, 0))],
        out_specs=pl.BlockSpec((tm, 1), lambda i: (i, 0)),
        compiler_params=_PAR,
    )(u, wc, v)
    return out[:, 0]


# ------------------------------ EMCDR (JAX) --------------------------------- #

class EMCDRPallas:
    def __init__(self, data_config, key):
        self.num_fields = data_config['num_fields']
        pair = data_config['src_tgt_pairs'][data_config['task']]
        self.uid_all = pair['uid']
        self.iid_all = pair['iid']
        self.share_user_num = pair['share_user_num']
        self.latent_dim = data_config['latent_dim']
        self.n_mlplayer = data_config['n_mlplayer']

        D = self.latent_dim
        keys = jax.random.split(key, 5)
        # src / tgt lookup-embedding "models" (user + item tables), stored bf16.
        self.src_user_emb = (0.1 * jax.random.normal(keys[0], (self.uid_all, D))).astype(jnp.bfloat16)
        self.src_item_emb = (0.1 * jax.random.normal(keys[1], (self.iid_all, D))).astype(jnp.bfloat16)
        self.tgt_user_emb = (0.1 * jax.random.normal(keys[2], (self.uid_all, D))).astype(jnp.bfloat16)
        self.tgt_item_emb = (0.1 * jax.random.normal(keys[3], (self.iid_all, D))).astype(jnp.bfloat16)

        # mapping MLP: n_mlplayer bias-free Linear(D, D) with NO activation
        # (exactly as in the PyTorch spec) => collapse into one weight:
        #   y = x @ W0.T @ W1.T @ ... = x @ Wc
        # NOTE: valid only because the chain is bias- and activation-free.
        bound = 1.0 / jnp.sqrt(jnp.float32(D))
        w_torch = jax.random.uniform(keys[4], (self.n_mlplayer, D, D),
                                     jnp.float32, minval=-bound, maxval=bound)
        wc = w_torch[0].T
        for l in range(1, self.n_mlplayer):
            wc = wc @ w_torch[l].T
        self.map_wc = wc.astype(jnp.bfloat16)      # [in, out], kernel does h @ Wc

    # emulate src_model.forward(x) / tgt_model.forward(x): emb[:,0,:]=user, emb[:,1,:]=item
    # TODO(synk): these gathers stay as plain-JAX glue; see header for the fusion plan.
    def _gather_fields(self, x, user_tab, item_tab):
        uemb = jnp.take(user_tab, x[:, 0], axis=0)   # [B, D]
        iemb = jnp.take(item_tab, x[:, 1], axis=0)   # [B, D]
        return uemb, iemb

    def forward(self, x, stage):
        if stage == 'train_src':
            uemb, iemb = self._gather_fields(x, self.src_user_emb, self.src_item_emb)
            return dot_score(uemb, iemb)                              # [B]
        elif stage in ('train_tgt', 'test_tgt'):
            uemb, iemb = self._gather_fields(x, self.tgt_user_emb, self.tgt_item_emb)
            return dot_score(uemb, iemb)                              # [B]
        elif stage == 'train_map':
            # x: [B] shared user ids
            src_emb = jnp.take(self.src_user_emb, x, axis=0)          # [B, D] bf16
            src_emb_mapping = mapping_forward(src_emb, self.map_wc)   # [B, D] f32
            tgt_emb = jnp.take(self.tgt_user_emb, x, axis=0).astype(jnp.float32)
            return src_emb_mapping, tgt_emb
        elif stage == 'test_map':
            # x: [B, 2]; replace tgt user emb with mapping(src user emb), then dot.
            src_uemb = jnp.take(self.src_user_emb, x[:, 0], axis=0)
            tgt_iemb = jnp.take(self.tgt_item_emb, x[:, 1], axis=0)
            return map_dot_score(src_uemb, self.map_wc, tgt_iemb)     # [B]
        else:
            raise ValueError(f"unknown stage {stage}")

    # TODO(synk): InfoNCE_loss is a training loss, not part of forward(); not ported.


# ---------------------------------- main ------------------------------------ #

if __name__ == "__main__":
    data_config = {
        'num_fields': 2,
        'task': '1',
        'src_tgt_pairs': {'1': {'uid': 50, 'iid': 60, 'share_user_num': 20}},
        'latent_dim': 32,
        'n_mlplayer': 2,
    }
    key = jax.random.PRNGKey(0)
    model = EMCDRPallas(data_config, key)

    B = 8
    k1, k2, k3 = jax.random.split(jax.random.PRNGKey(0), 3)
    uid = jax.random.randint(k1, (B, 1), 0, data_config['src_tgt_pairs']['1']['uid'])
    iid = jax.random.randint(k2, (B, 1), 0, data_config['src_tgt_pairs']['1']['iid'])
    x_pair = jnp.concatenate([uid, iid], axis=1).astype(jnp.int32)          # [B, 2]
    x_map = jax.random.randint(
        k3, (B,), 0, data_config['src_tgt_pairs']['1']['share_user_num']).astype(jnp.int32)

    out_src = model.forward(x_pair, 'train_src')
    out_tgt = model.forward(x_pair, 'train_tgt')
    out_map_src, out_map_tgt = model.forward(x_map, 'train_map')
    out_test_map = model.forward(x_pair, 'test_map')
    jax.block_until_ready((out_src, out_tgt, out_map_src, out_map_tgt, out_test_map))

    # ----------------------- plain-JAX reference checks --------------------- #
    def ref_dot(u, v):
        return jnp.sum(u.astype(jnp.float32) * v.astype(jnp.float32), axis=1)

    su = jnp.take(model.src_user_emb, x_pair[:, 0], axis=0)
    si = jnp.take(model.src_item_emb, x_pair[:, 1], axis=0)
    tu = jnp.take(model.tgt_user_emb, x_pair[:, 0], axis=0)
    ti = jnp.take(model.tgt_item_emb, x_pair[:, 1], axis=0)
    mu = jnp.take(model.src_user_emb, x_map, axis=0)

    ref_src = ref_dot(su, si)
    ref_tgt = ref_dot(tu, ti)
    ref_map_src = jnp.dot(mu, model.map_wc, preferred_element_type=jnp.float32)
    ref_map_tgt = jnp.take(model.tgt_user_emb, x_map, axis=0).astype(jnp.float32)
    ref_test = jnp.sum(jnp.dot(su, model.map_wc, preferred_element_type=jnp.float32)
                       * ti.astype(jnp.float32), axis=1)

    assert out_src.shape == (B,) and out_tgt.shape == (B,)
    assert out_map_src.shape == (B, data_config['latent_dim'])
    assert out_map_tgt.shape == (B, data_config['latent_dim'])
    assert out_test_map.shape == (B,)
    assert jnp.allclose(out_src, ref_src, rtol=1e-2, atol=1e-2)
    assert jnp.allclose(out_tgt, ref_tgt, rtol=1e-2, atol=1e-2)
    assert jnp.allclose(out_map_src, ref_map_src, rtol=1e-2, atol=1e-2)
    assert jnp.allclose(out_map_tgt, ref_map_tgt, rtol=1e-2, atol=1e-2)
    assert jnp.allclose(out_test_map, ref_test, rtol=1e-2, atol=1e-2)

    print("KERNEL_OK")
</pallas_src>

<mosaic_0001>
module attributes {stable_mosaic.version = 11 : i64} {
  func.func @_dot_score_kernel(%arg0: i32, %arg1: memref<8x32xbf16, #tpu.memory_space<vmem>>, %arg2: memref<8x32xbf16, #tpu.memory_space<vmem>>, %arg3: memref<8x1xf32, #tpu.memory_space<vmem>>) attributes {dimension_semantics = [#tpu.dimension_semantics<parallel>], iteration_bounds = array<i64: 1>, scalar_prefetch = 0 : i64, scratch_operands = 0 : i64, tpu.core_type = #tpu.core_type<tc>, window_params = [{transform_indices = @transform_0, window_bounds = array<i64: 8, 32>}, {transform_indices = @transform_1, window_bounds = array<i64: 8, 32>}, {transform_indices = @transform_2, window_bounds = array<i64: 8, 1>}]} {
    %c0 = arith.constant 0 : index
    %c0_0 = arith.constant 0 : index
    %0 = vector.load %arg1[%c0, %c0_0] : memref<8x32xbf16, #tpu.memory_space<vmem>>, vector<8x32xbf16>
    %c0_1 = arith.constant 0 : index
    %c0_2 = arith.constant 0 : index
    %1 = vector.load %arg2[%c0_1, %c0_2] : memref<8x32xbf16, #tpu.memory_space<vmem>>, vector<8x32xbf16>
    %2 = arith.mulf %0, %1 : vector<8x32xbf16>
    %3 = arith.extf %2 : vector<8x32xbf16> to vector<8x32xf32>
    %cst = arith.constant dense<0.000000e+00> : vector<8xf32>
    %4 = vector.multi_reduction <add>, %3, %cst [1] : vector<8x32xf32> to vector<8xf32>
    %5 = vector.shape_cast %4 : vector<8xf32> to vector<8x1xf32>
    %c0_3 = arith.constant 0 : index
    %c0_4 = arith.constant 0 : index
    %6 = vector.load %arg3[%c0_3, %c0_4] : memref<8x1xf32, #tpu.memory_space<vmem>>, vector<8x1xf32>
    tpu.vector_store %arg3[%c0_3, %c0_4], %5 {strides = array<i32>} : memref<8x1xf32, #tpu.memory_space<vmem>>, vector<8x1xf32>,
    return
  }
  func.func @transform_0(%arg0: i32) -> (i32, i32) {
    %c0_i32 = arith.constant 0 : i32
    %c0_i32_0 = arith.constant 0 : i32
    return %arg0, %c0_i32 : i32, i32
  }
  func.func @transform_1(%arg0: i32) -> (i32, i32) {
    %c0_i32 = arith.constant 0 : i32
    %c0_i32_0 = arith.constant 0 : i32
    return %arg0, %c0_i32 : i32, i32
  }
  func.func @transform_2(%arg0: i32) -> (i32, i32) {
    %c0_i32 = arith.constant 0 : i32
    %c0_i32_0 = arith.constant 0 : i32
    return %arg0, %c0_i32 : i32, i32
  }
}

</mosaic_0001>

<bundles_post_ra>
// kernel: tpu_custom_call.1
= control target key start
LH: loop header
LB: loop body
LE: loop exit
PB: predicated region body
PF: predicated region fallthrough
CT: control target
= control target key end

     0   :  { %7 = vsyncpa [#allocation3], 0  ;;  %s138_s0 = inlined_call_operand.hbm [shape: bf16[8,32], index: 0, kind: input, shape index: {}]   ;;  %s139_s1 = inlined_call_operand.hbm [shape: bf16[8,32], index: 1, kind: input, shape index: {}]   ;;  %s140_s2 = inlined_call_operand.vmem [shape: f32[8,1], index: 2, kind: output, shape index: {}]  }
   0x1   :  { %s14_s11 = sshll.u32 %s138_s0, 4  ;;  %s15_s11 = int_to_ptr.hbm [resolvable:$true] %s14_s11 }
   0x2   :  { %8 = vsyncpa [#allocation5], 0  ;;  %s112_s12 = smov [#allocation2]   ;;  %s25_s16 = sshll.u32 %s139_s1, 4  ;;  %s26_s16 = int_to_ptr.hbm [resolvable:$true] %s25_s16 }
   0x3   :  { %s16_s13 = sshll.u32 %s112_s12, 4  ;;  %s113_s17 = smov [#allocation4]   ;;  %s17_s13 = int_to_ptr.vmem [resolvable:$true] %s16_s13 }
   0x4   :  { %19 = dma.hbm_to_vmem [thread:$0]  %s15_s11, 64, %s17_s13, [#allocation3]  }
   0x5   :  { %s27_s18 = sshll.u32 %s113_s17, 4  ;;  %s28_s18 = int_to_ptr.vmem [resolvable:$true] %s27_s18 }
   0x6   :  { %30 = dma.hbm_to_vmem [thread:$0]  %s26_s16, 64, %s28_s18, [#allocation5]  }
   0x7   :  { %108 = dma.done.wait [#allocation3], 64  }
   0x8   :  { %109 = vsyncadd [#allocation3], 4294967232 }
   0x9   :  { %110 = dma.done.wait [#allocation5], 64  }
   0xa   :  { %111 = vsyncadd [#allocation5], 4294967232  ;;  %v39_v0 = vld [vmem:[#allocation2] sm:$0xf]  ;;  %v40_v1 = vld [vmem:[#allocation4] sm:$0xf] }
   0xb   :  { %v41_v2 = vunpack.c.l.bf16 %v39_v0  ;;  %v42_v3 = vunpack.c.l.bf16 %v40_v1  ;;  %vm46_vm0 = vcmask 261120   ;;  %vm50_vm1 = vcmask 7168  }
   0xd   :  { %v43_v4 = vmul.f32 %v42_v3, %v41_v2 }
   0xf   :  { %v44_v5 = vpack.c.bf16 %v43_v4, %v43_v4 }
  0x11   :  { %v45_v6 = vunpack.c.l.bf16 %v44_v5 }
  0x13   :  { %v47_v7 = vsel %vm46_vm0, %v45_v6, 0.0 }
  0x14   :  { %48 = vadd.xlane.f32.xlu0 %v47_v7 }
  0x87   :  { %v49_v8 = vpop.xlane.xlu0 %48 }
  0x88   :  { %51 = vst.msk [vmem:[%s140_s2] sm:$0xff] %vm50_vm1, %v49_v8 }
  0x89   :  { %56 = vsyncpa [#allocation3], 1 }
  0x8a   :  { %57 = vsyncpa [#allocation5], 1 }

</bundles_post_ra>
